<compile_context>
chip_gen: v6e
topology: v6e:2x2x1
jax: 0.10.0
libtpu: 0.0.40
codegen_flags: <defaults>
</compile_context>

<pallas_src>
import functools

import jax
import jax.numpy as jnp
from jax import lax
from jax.experimental import pallas as pl
from jax.experimental.pallas import tpu as pltpu


def _round_up(v, m):
    return ((v + m - 1) // m) * m


# Contract the shared last (lane) dim of both operands: A @ A^T on the MXU
# without materializing a transpose.
_GRAM_DIMS = (((1,), (1,)), ((), ()))


def _cam_kernel(c_real, gamma_ref, x_ref, o_ref,
                x_slab_ref, energy_ref, attn_ref):
    """One (batch, phase, n-tile) grid step.

    gamma_ref  : SMEM scalar prefetch, shape (1,), f32
    x_ref      : VMEM (1, C_pad, tn) input tile (native dtype)
    o_ref      : VMEM (1, C_pad, tn) output tile
    x_slab_ref : VMEM (C_pad, N_pad) resident copy of this batch's X
    energy_ref : VMEM (C_pad, C_pad) f32 energy accumulator
    attn_ref   : VMEM (C_pad, C_pad) bf16 gamma-folded attention
    """
    p = pl.program_id(1)
    n = pl.program_id(2)
    c_pad = energy_ref.shape[0]
    tn = x_ref.shape[2]
    start = pl.multiple_of(n * tn, 128)

    # ---- phase 0: stash the tile in the slab, accumulate energy = X @ X^T ---
    @pl.when(p == 0)
    def _():
        xt = x_ref[0]                                    # (C_pad, tn), native
        x_slab_ref[:, pl.ds(start, tn)] = xt             # keep X resident

        if x_ref.dtype == jnp.float32:
            # Compensated bf16x3 split: keeps the softmax exponent at ~f32
            # accuracy while staying on the bf16 MXU fast path.
            hi = xt.astype(jnp.bfloat16)
            lo = (xt - hi.astype(jnp.float32)).astype(jnp.bfloat16)
            acc = lax.dot_general(hi, hi, _GRAM_DIMS,
                                  preferred_element_type=jnp.float32)
            acc = acc + lax.dot_general(hi, lo, _GRAM_DIMS,
                                        preferred_element_type=jnp.float32)
            acc = acc + lax.dot_general(lo, hi, _GRAM_DIMS,
                                        preferred_element_type=jnp.float32)
        else:
            acc = lax.dot_general(xt, xt, _GRAM_DIMS,
                                  preferred_element_type=jnp.float32)

        @pl.when(n == 0)
        def _():
            energy_ref[...] = acc            # direct assign: no zero-init pass

        @pl.when(n != 0)
        def _():
            energy_ref[...] = energy_ref[...] + acc

    # ---- phase boundary: softmax(rowmax(E)-E) == softmax(rowmin(E)-E) -------
    # gamma is folded in here once and the attention pre-cast to bf16, so the
    # per-tile phase-1 epilogue is just dot + residual add.
    @pl.when(jnp.logical_and(p == 1, n == 0))
    def _():
        energy = energy_ref[...]
        shifted = jnp.min(energy, axis=-1, keepdims=True) - energy   # <= 0
        e = jnp.exp(shifted)
        if c_pad != c_real:
            # Padded channel columns must not contribute to the softmax sum.
            col = lax.broadcasted_iota(jnp.int32, (c_pad, c_pad), 1)
            e = jnp.where(col < c_real, e, 0.0)
        denom = jnp.sum(e, axis=-1, keepdims=True)
        gamma = gamma_ref[0].astype(jnp.float32)
        # Exact (non-approx) reciprocal: one-time (C,1) op per batch.
        attn_ref[...] = ((gamma / denom) * e).astype(attn_ref.dtype)

    # ---- phase 1: out_tile = (gamma*attention) @ x_tile + x_tile -------------
    @pl.when(p == 1)
    def _():
        xt = x_slab_ref[:, pl.ds(start, tn)]             # no HBM re-read
        out = jnp.dot(attn_ref[...], xt.astype(jnp.bfloat16),
                      preferred_element_type=jnp.float32)
        o_ref[0] = (out + xt.astype(jnp.float32)).astype(o_ref.dtype)


def cam_forward(x, gamma):
    """Channel Attention Module forward.

    x:     (B, C, H, W)
    gamma: scalar (the learnable Scale parameter; init 0 in the module)
    """
    B, C, H, W = x.shape
    N = H * W
    dtype = x.dtype
    itemsize = jnp.dtype(dtype).itemsize

    # bf16 MXU operands pack two rows per sublane -> align C to 16.
    c_pad = _round_up(C, 16)
    n_base = _round_up(N, 128)

    # Generation-aware VMEM budget (64 MiB on v7x, 128 MiB on v5e/v6e).
    try:
        vmem_cap = int(pltpu.get_tpu_info().vmem_capacity_bytes)
    except Exception:
        vmem_cap = 128 * 1024 * 1024
    budget = vmem_cap // 2

    def est_bytes(tn):
        n_pad = _round_up(n_base, tn)
        pipeline = 4 * c_pad * tn * itemsize     # double-buffered in + out tiles
        slab = c_pad * n_pad * itemsize          # resident X slab
        temps = 4 * c_pad * tn * 4               # in-kernel f32/bf16 temporaries
        scratch = 4 * c_pad * c_pad * 4          # energy + softmax temps + attn
        return pipeline + slab + temps + scratch

    cands = sorted({c for c in (n_base, 8192, 4096, 2048, 1024, 512, 256, 128)
                    if c <= n_base}, reverse=True)
    fitting = [c for c in cands if est_bytes(c) <= budget] or [cands[-1]]
    # Prefer a tile width that divides the 128-aligned N (avoids extra padding).
    tn = next((c for c in fitting if n_base % c == 0), fitting[0])
    n_pad = _round_up(n_base, tn)
    n_tiles = n_pad // tn

    x_flat = x.reshape(B, C, N)
    if c_pad != C or n_pad != N:
        # Exact padding: zero spatial columns add 0 to energy and 0 to attn @ x;
        # zero channel rows are masked in the softmax and sliced off below.
        x_flat = jnp.pad(x_flat, ((0, 0), (0, c_pad - C), (0, n_pad - N)))

    gamma_arr = jnp.asarray(gamma, dtype=jnp.float32).reshape(1)
    vmem_limit = int(min(vmem_cap * 3 // 4,
                         max(est_bytes(tn) + (16 << 20), 32 << 20)))

    out_flat = pl.pallas_call(
        functools.partial(_cam_kernel, C),
        out_shape=jax.ShapeDtypeStruct((B, c_pad, n_pad), dtype),
        grid_spec=pltpu.PrefetchScalarGridSpec(
            num_scalar_prefetch=1,                    # gamma lands in SMEM
            grid=(B, 2, n_tiles),                     # (batch, phase, N tile)
            # Phase 1 pins the input block to (b,0,0): no new input DMAs; the
            # kernel reads X from the resident VMEM slab instead.
            in_specs=[
                pl.BlockSpec((1, c_pad, tn),
                             lambda b, p, n, g: (b, 0, n * (1 - p))),
            ],
            # Output pinning: during phase 0 the output block index stays at
            # (b,0,0), so the (unwritten) buffer is never flushed; it is fully
            # overwritten at (p=1, n=0) before the block index ever changes.
            # Do not edit this index_map without revisiting that invariant.
            out_specs=pl.BlockSpec((1, c_pad, tn),
                                   lambda b, p, n, g: (b, 0, n * p)),
            scratch_shapes=[
                pltpu.VMEM((c_pad, n_pad), dtype),        # resident X slab
                pltpu.VMEM((c_pad, c_pad), jnp.float32),  # energy accumulator
                pltpu.VMEM((c_pad, c_pad), jnp.bfloat16), # gamma-folded attn
            ],
        ),
        compiler_params=pltpu.CompilerParams(
            dimension_semantics=("parallel", "arbitrary", "arbitrary"),
            vmem_limit_bytes=vmem_limit,
        ),
    )(gamma_arr, x_flat)

    return out_flat[:, :C, :N].reshape(B, C, H, W)


def cam_reference(x, gamma):
    """Pure-JAX reference mirroring the PyTorch module (f32, highest precision)."""
    B, C, H, W = x.shape
    q = x.reshape(B, C, -1).astype(jnp.float32)                 # (B, C, N)
    energy = jnp.einsum("bcn,bdn->bcd", q, q, precision="highest")
    energy_new = jnp.max(energy, axis=-1, keepdims=True) - energy
    attention = jax.nn.softmax(energy_new, axis=-1)
    out = jnp.einsum("bcd,bdn->bcn", attention, q,
                     precision="highest").reshape(B, C, H, W)
    return (gamma * out + x.astype(jnp.float32)).astype(x.dtype)


if __name__ == "__main__":
    key = jax.random.PRNGKey(0)
    k1, k2, k3 = jax.random.split(key, 3)

    # Case 1: small, exercises channel padding (C=4 -> 16) + the softmax mask.
    # Case 2: exercises spatial padding (N=576 -> 640) and B=1.
    # Case 3: bf16 path (no compensated split, native bf16 MXU operands).
    cases = [
        jax.random.normal(k1, (2, 4, 16, 16), dtype=jnp.float32),
        jax.random.normal(k2, (1, 32, 24, 24), dtype=jnp.float32),
        jax.random.normal(k3, (1, 8, 8, 16), dtype=jnp.float32).astype(jnp.bfloat16),
    ]

    # gamma = 0.0 matches Scale(0) init (exact residual passthrough); 0.5
    # exercises the attention path.
    for x in cases:
        for gamma in (0.0, 0.5):
            out = cam_forward(x, gamma)
            jax.block_until_ready(out)
            ref = cam_reference(x, gamma)
            assert out.shape == x.shape
            err = float(jnp.max(jnp.abs(out.astype(jnp.float32)
                                        - ref.astype(jnp.float32))))
            # Tolerance: the attention weights and the value matmul run in bf16
            # on the MXU (per the perf review), giving ~2^-9 relative rounding
            # on the gamma-scaled term only; the energy/softmax exponent keeps
            # ~f32 accuracy via the compensated split.  Observed worst case at
            # these shapes is well under 1e-2.
            assert jnp.allclose(out.astype(jnp.float32), ref.astype(jnp.float32),
                                atol=2e-2, rtol=2e-2), (
                f"mismatch at shape={x.shape} dtype={x.dtype} "
                f"gamma={gamma}: max err {err}")

    print("KERNEL_OK")
</pallas_src>

<mosaic_0001>
module attributes {stable_mosaic.version = 11 : i64} {
  func.func @_cam_kernel(%arg0: i32, %arg1: i32, %arg2: i32, %arg3: memref<1xf32, #tpu.memory_space<smem>>, %arg4: memref<1x16x256xf32, #tpu.memory_space<vmem>>, %arg5: memref<1x16x256xf32, #tpu.memory_space<vmem>>, %arg6: memref<16x256xf32, #tpu.memory_space<vmem>>, %arg7: memref<16x16xf32, #tpu.memory_space<vmem>>, %arg8: memref<16x16xbf16, #tpu.memory_space<vmem>>) attributes {dimension_semantics = [#tpu.dimension_semantics<parallel>, #tpu.dimension_semantics<arbitrary>, #tpu.dimension_semantics<arbitrary>], iteration_bounds = array<i64: 2, 2, 1>, scalar_prefetch = 1 : i64, scratch_operands = 3 : i64, tpu.core_type = #tpu.core_type<tc>, window_params = [{transform_indices = @transform_0, window_bounds = array<i64: 1, 16, 256>}, {transform_indices = @transform_1, window_bounds = array<i64: 1, 16, 256>}]} {
    %c256_i32 = arith.constant 256 : i32
    %0 = arith.muli %arg2, %c256_i32 : i32
    %1 = tpu.assume_multiple %0, 128 : i32
    %c0_i32 = arith.constant 0 : i32
    %2 = arith.cmpi eq, %arg1, %c0_i32 : i32
    %3 = arith.extui %2 : i1 to i32
    %c0_i32_0 = arith.constant 0 : i32
    %4 = arith.cmpi ne, %3, %c0_i32_0 : i32
    scf.if %4 {
      %c0 = arith.constant 0 : index
      %c0_5 = arith.constant 0 : index
      %c0_6 = arith.constant 0 : index
      %13 = vector.load %arg4[%c0, %c0_5, %c0_6] : memref<1x16x256xf32, #tpu.memory_space<vmem>>, vector<1x16x256xf32>
      %14 = vector.shape_cast %13 : vector<1x16x256xf32> to vector<16x256xf32>
      %c0_7 = arith.constant 0 : index
      %15 = arith.index_cast %1 : i32 to index
      %16 = vector.load %arg6[%c0_7, %15] : memref<16x256xf32, #tpu.memory_space<vmem>>, vector<16x256xf32>
      tpu.vector_store %arg6[%c0_7, %15], %14 {strides = array<i32>} : memref<16x256xf32, #tpu.memory_space<vmem>>, vector<16x256xf32>,
      %17 = arith.truncf %14 : vector<16x256xf32> to vector<16x256xbf16>
      %18 = arith.extf %17 : vector<16x256xbf16> to vector<16x256xf32>
      %19 = arith.subf %14, %18 : vector<16x256xf32>
      %20 = arith.truncf %19 : vector<16x256xf32> to vector<16x256xbf16>
      %cst = arith.constant dense<0.000000e+00> : vector<16x16xf32>
      %21 = tpu.matmul %17, %17, %cst {dimension_numbers = #tpu.dot_dimension_numbers<[1], [1], [0], [0], [0, 0, 1, 0], [], []>} : vector<16x256xbf16>, vector<16x256xbf16>, vector<16x16xf32> -> vector<16x16xf32>
      %cst_8 = arith.constant dense<0.000000e+00> : vector<16x16xf32>
      %22 = tpu.matmul %17, %20, %cst_8 {dimension_numbers = #tpu.dot_dimension_numbers<[1], [1], [0], [0], [0, 0, 1, 0], [], []>} : vector<16x256xbf16>, vector<16x256xbf16>, vector<16x16xf32> -> vector<16x16xf32>
      %23 = arith.addf %21, %22 : vector<16x16xf32>
      %cst_9 = arith.constant dense<0.000000e+00> : vector<16x16xf32>
      %24 = tpu.matmul %20, %17, %cst_9 {dimension_numbers = #tpu.dot_dimension_numbers<[1], [1], [0], [0], [0, 0, 1, 0], [], []>} : vector<16x256xbf16>, vector<16x256xbf16>, vector<16x16xf32> -> vector<16x16xf32>
      %25 = arith.addf %23, %24 : vector<16x16xf32>
      %c0_i32_10 = arith.constant 0 : i32
      %26 = arith.cmpi eq, %arg2, %c0_i32_10 : i32
      %27 = arith.extui %26 : i1 to i32
      %c0_i32_11 = arith.constant 0 : i32
      %28 = arith.cmpi ne, %27, %c0_i32_11 : i32
      scf.if %28 {
        %c0_14 = arith.constant 0 : index
        %c0_15 = arith.constant 0 : index
        %32 = vector.load %arg7[%c0_14, %c0_15] : memref<16x16xf32, #tpu.memory_space<vmem>>, vector<16x16xf32>
        tpu.vector_store %arg7[%c0_14, %c0_15], %25 {strides = array<i32>} : memref<16x16xf32, #tpu.memory_space<vmem>>, vector<16x16xf32>,
      } else {
      }
      %c0_i32_12 = arith.constant 0 : i32
      %29 = arith.cmpi ne, %arg2, %c0_i32_12 : i32
      %30 = arith.extui %29 : i1 to i32
      %c0_i32_13 = arith.constant 0 : i32
      %31 = arith.cmpi ne, %30, %c0_i32_13 : i32
      scf.if %31 {
        %c0_14 = arith.constant 0 : index
        %c0_15 = arith.constant 0 : index
        %32 = vector.load %arg7[%c0_14, %c0_15] : memref<16x16xf32, #tpu.memory_space<vmem>>, vector<16x16xf32>
        %33 = arith.addf %32, %25 : vector<16x16xf32>
        %c0_16 = arith.constant 0 : index
        %c0_17 = arith.constant 0 : index
        %34 = vector.load %arg7[%c0_16, %c0_17] : memref<16x16xf32, #tpu.memory_space<vmem>>, vector<16x16xf32>
        tpu.vector_store %arg7[%c0_16, %c0_17], %33 {strides = array<i32>} : memref<16x16xf32, #tpu.memory_space<vmem>>, vector<16x16xf32>,
      } else {
      }
    } else {
    }
    %c1_i32 = arith.constant 1 : i32
    %5 = arith.cmpi eq, %arg1, %c1_i32 : i32
    %c0_i32_1 = arith.constant 0 : i32
    %6 = arith.cmpi eq, %arg2, %c0_i32_1 : i32
    %7 = arith.andi %5, %6 : i1
    %8 = arith.extui %7 : i1 to i32
    %c0_i32_2 = arith.constant 0 : i32
    %9 = arith.cmpi ne, %8, %c0_i32_2 : i32
    scf.if %9 {
      %c0 = arith.constant 0 : index
      %c0_5 = arith.constant 0 : index
      %13 = vector.load %arg7[%c0, %c0_5] : memref<16x16xf32, #tpu.memory_space<vmem>>, vector<16x16xf32>
      %cst = arith.constant dense<0x7F800000> : vector<16xf32>
      %14 = vector.multi_reduction <minimumf>, %13, %cst [1] : vector<16x16xf32> to vector<16xf32>
      %15 = vector.shape_cast %14 : vector<16xf32> to vector<16x1xf32>
      %16 = vector.broadcast %15 : vector<16x1xf32> to vector<16x16xf32>
      %17 = arith.subf %16, %13 : vector<16x16xf32>
      %18 = math.exp %17 : vector<16x16xf32>
      %19 = tpu.iota {dimensions = array<i32: 1>} : vector<16x16xi32>
      %c4_i32 = arith.constant 4 : i32
      %20 = vector.broadcast %c4_i32 : i32 to vector<16x16xi32>
      %21 = arith.cmpi slt, %19, %20 : vector<16x16xi32>
      %cst_6 = arith.constant 0.000000e+00 : f32
      %22 = vector.broadcast %cst_6 : f32 to vector<16x16xf32>
      %23 = arith.select %21, %18, %22 : vector<16x16xi1>, vector<16x16xf32>
      %cst_7 = arith.constant dense<0.000000e+00> : vector<16xf32>
      %24 = vector.multi_reduction <add>, %23, %cst_7 [1] : vector<16x16xf32> to vector<16xf32>
      %25 = vector.shape_cast %24 : vector<16xf32> to vector<16x1xf32>
      %c0_8 = arith.constant 0 : index
      %26 = memref.load %arg3[%c0_8] : memref<1xf32, #tpu.memory_space<smem>>
      %27 = vector.broadcast %26 : f32 to vector<16x1xf32>
      %28 = arith.divf %27, %25 : vector<16x1xf32>
      %29 = vector.broadcast %28 : vector<16x1xf32> to vector<16x16xf32>
      %30 = arith.mulf %29, %23 : vector<16x16xf32>
      %31 = arith.truncf %30 : vector<16x16xf32> to vector<16x16xbf16>
      %c0_9 = arith.constant 0 : index
      %c0_10 = arith.constant 0 : index
      %32 = vector.load %arg8[%c0_9, %c0_10] : memref<16x16xbf16, #tpu.memory_space<vmem>>, vector<16x16xbf16>
      tpu.vector_store %arg8[%c0_9, %c0_10], %31 {strides = array<i32>} : memref<16x16xbf16, #tpu.memory_space<vmem>>, vector<16x16xbf16>,
    } else {
    }
    %c1_i32_3 = arith.constant 1 : i32
    %10 = arith.cmpi eq, %arg1, %c1_i32_3 : i32
    %11 = arith.extui %10 : i1 to i32
    %c0_i32_4 = arith.constant 0 : i32
    %12 = arith.cmpi ne, %11, %c0_i32_4 : i32
    scf.if %12 {
      %c0 = arith.constant 0 : index
      %13 = arith.index_cast %1 : i32 to index
      %14 = vector.load %arg6[%c0, %13] : memref<16x256xf32, #tpu.memory_space<vmem>>, vector<16x256xf32>
      %c0_5 = arith.constant 0 : index
      %c0_6 = arith.constant 0 : index
      %15 = vector.load %arg8[%c0_5, %c0_6] : memref<16x16xbf16, #tpu.memory_space<vmem>>, vector<16x16xbf16>
      %16 = arith.truncf %14 : vector<16x256xf32> to vector<16x256xbf16>
      %cst = arith.constant dense<0.000000e+00> : vector<16x256xf32>
      %17 = tpu.matmul %15, %16, %cst {dimension_numbers = #tpu.dot_dimension_numbers<[1], [0], [0], [1], [0, 0, 1, 1], [], []>} : vector<16x16xbf16>, vector<16x256xbf16>, vector<16x256xf32> -> vector<16x256xf32>
      %18 = arith.addf %17, %14 : vector<16x256xf32>
      %c0_7 = arith.constant 0 : index
      %c0_8 = arith.constant 0 : index
      %c0_9 = arith.constant 0 : index
      %19 = vector.load %arg5[%c0_7, %c0_8, %c0_9] : memref<1x16x256xf32, #tpu.memory_space<vmem>>, vector<1x16x256xf32>
      %20 = vector.shape_cast %19 : vector<1x16x256xf32> to vector<16x256xf32>
      %21 = vector.shape_cast %18 : vector<16x256xf32> to vector<1x16x256xf32>
      tpu.vector_store %arg5[%c0_7, %c0_8, %c0_9], %21 {strides = array<i32>} : memref<1x16x256xf32, #tpu.memory_space<vmem>>, vector<1x16x256xf32>,
    } else {
    }
    return
  }
  func.func @transform_0(%arg0: i32, %arg1: i32, %arg2: i32, %arg3: memref<1xf32, #tpu.memory_space<smem>>) -> (i32, i32, i32) {
    %c1_i32 = arith.constant 1 : i32
    %0 = arith.subi %c1_i32, %arg1 : i32
    %1 = arith.muli %arg2, %0 : i32
    %c0_i32 = arith.constant 0 : i32
    %c0_i32_0 = arith.constant 0 : i32
    return %arg0, %c0_i32, %1 : i32, i32, i32
  }
  func.func @transform_1(%arg0: i32, %arg1: i32, %arg2: i32, %arg3: memref<1xf32, #tpu.memory_space<smem>>) -> (i32, i32, i32) {
    %0 = arith.muli %arg2, %arg1 : i32
    %c0_i32 = arith.constant 0 : i32
    %c0_i32_0 = arith.constant 0 : i32
    return %arg0, %c0_i32, %0 : i32, i32, i32
  }
}

</mosaic_0001>

<bundles_post_ra>
// kernel: tpu_custom_call.1
= control target key start
LH: loop header
LB: loop body
LE: loop exit
PB: predicated region body
PF: predicated region fallthrough
CT: control target
= control target key end

     0   :  { %s1032_s0 = inlined_call_operand.<no memory space> [shape: f32[1], index: 0, kind: input, shape index: {}]   ;;  %s1033_s1 = inlined_call_operand.hbm [shape: f32[2,16,256], index: 1, kind: input, shape index: {}]   ;;  %s1034_s2 = inlined_call_operand.hbm [shape: f32[2,16,256], index: 2, kind: output, shape index: {}]  }
   0x1   :  { %7 = sst [smem:[#allocation6]] %s1032_s0 }
   0x2   :  { %8 = vsyncpa [#allocation8], 0 }
   0x3   :  { %10 = vsyncpa [#allocation8 + $0x1], 0 }
   0x4   :  { %11 = vsyncpa [#allocation9], 0 }
   0x5   :  { %13 = vsyncpa [#allocation9 + $0x1], 0  ;;  %s854_s11 = smov 0   ;;  %s856_s12 = smov 0  }
   0x6   :  { %s858_s13 = smov 0   ;;  %s860_s14 = smov 0  }
   0x7   :  { %s862_s15 = smov 0   ;;  %s864_s16 = smov 0  }
   0x8   :  { %s866_s17 = smov 0   ;;  %s868_s18 = smov 0  }
   0x9 LB: > { %s584_s0 = sadd.s32 4294967295, %s827_s18   ;;  %s585_s19 = sadd.s32 4294967294, %s827_s18   ;;  %s827_s18 = sphi %s868_s18, %s19_s18   ;;  %s823_s17 = sphi %s866_s17, %s1046_s17   ;;  %s819_s16 = sphi %s864_s16, %s1045_s16   ;;  %s815_s15 = sphi %s862_s15, %s1044_s15   ;;  %s811_s14 = sphi %s860_s14, %s1043_s14   ;;  %s807_s13 = sphi %s858_s13, %s1042_s13   ;;  %s803_s12 = sphi %s856_s12, %s1041_s12   ;;  %s799_s11 = sphi %s854_s11, %s1040_s11  }
   0xa   : > { %s34_s20 = sadd.s32 1, %s819_s16  ;;  %s38_s21 = sadd.s32 1, %s823_s17 }
   0xb   : > { %p36_p0 = scmp.ge.s32.totalorder %s34_s20, 2  ;;  %s51_s22 = sadd.s32 1, %s807_s13 }
   0xc   : > { %p58_p1 = scmp.ne.s32.totalorder %s807_s13, %s803_s12  ;;  %p59_p2 = scmp.eq.s32.totalorder %s827_s18, 0 }
   0xd   : > { %s1048_s20 = smov (%p36_p0, %s34_s20), 0  ;;  %s1050_s21 = smov (!%p36_p0, %s38_s21), %s823_s17 }
   0xe   : > { %p905_p3 = por %p59_p2, %p58_p1  ;;  %p64_p4 = scmp.ne.s32.totalorder %s803_s12, %s799_s11 }
   0xf   : > { %p40_p5 = scmp.ge.s32.totalorder %s1050_s21, 2  ;;  %p65_p6 = scmp.eq.s32.totalorder %s584_s0, 0 }
  0x10   : > { %p92_p7 = scmp.eq.s32.totalorder %s584_s0, 3  ;;  %p98_p8 = scmp.eq.s32.totalorder %s585_s19, 3 }
  0x11   : > { %s1052_s21 = smov (%p40_p5, %s1050_s21), 0  ;;  %p913_p9 = por %p65_p6, %p64_p4 }
  0x12   : > { %p917_p10 = por %p92_p7, %p58_p1  ;;  %s46_s26 = ssub.s32 %s823_s17, %s1052_s21 }
  0x13   : > { %p923_p11 = por %p98_p8, %p64_p4  ;;  %p49_p12 = scmp.eq.s32.totalorder %s46_s26, 0 }
  0x14   : > { %p623_p13 = scmp.lt.s32.totalorder %s827_s18, 4  ;;  %s118_s28 = sand.u32 1, %s807_s13  }
  0x15   : > { %s930_s29 = scalar_select %p49_p12, %s807_s13, %s51_s22  }
  0x16   : > { %s588_s30 = sshll.u32 %s118_s28, 5  ;;  %s606_s3 = sshll.u32 %s823_s17, 9 }
  0x17   : > { %s132_s6 = scalar_lea.hbm %s1033_s1, %s606_s3  ;;  %s122_s7 = scalar_lea.vmem [#allocation7], %s588_s30 }
  0x18   : > { %s133_s8 = sshll.u32 %s122_s7, 4  ;;  %p938_p0 = pnand %p623_p13, %p905_p3  ;;  %s134_s8 = int_to_ptr.vmem [resolvable:$true] %s133_s8 }
  0x19   : > { %p591_p1 = scmp.ge.s32.totalorder %s827_s18, 1  ;;  %s119_s10 = scalar_lea.sflag [#allocation8], %s118_s28 }
  0x1a   : > { %p705_p2 = pneg %p938_p0  ;;  %s716_s0 = scalar_lea.vmem %s134_s8, 512 }
  0x1b   : > { %p717_p4 = scmp.ne.s32.totalorder %s134_s8, %s716_s0  ;;  %s829_s19 = smov [#allocation7]  }
  0x1c   : > { %s721_s22 = sshll.u32 %s829_s19, 4  ;;  %s722_s22 = int_to_ptr.vmem [resolvable:$false] %s721_s22 }
  0x1d   : > { %p719_p5 = pnand %p717_p4, %p705_p2  ;;  %s723_s26 = scalar_lea.vmem %s722_s22, 1024 }
  0x1e   : > { %p724_p7 = scmp.lt.s32.totalorder %s134_s8, %s722_s22  ;;  %p725_p8 = scmp.lt.s32.totalorder %s723_s26, %s716_s0 }
  0x1f   : > { %p720_p6 = pneg %p719_p5 }
  0x20   : > { %p726_p12 = por %p725_p8, %p724_p7 }
  0x22   : > { %p727_p3 = pnand %p726_p12, %p720_p6 }
  0x24   : > { %730 = shalt.err (!%p727_p3)
}
  0x25   : > { %s830_s23 = smov 256   ;;  %s831_s28 = smov 16  }
  0x26   : > { %618 = dma.hbm_to_vmem [thread:$0]  (!%p938_p0), %s132_s6, 512, %s134_s8, %s119_s10, %s830_s23, %s830_s23, %s831_s28  }
  0x27   : > { %p141_p13 = scmp.lt.s32.totalorder %s827_s18, 5 }
  0x29   : > { %p142_p2 = pnand %p591_p1, %p141_p13 }
  0x2a   : > { %s951_s30 = sand.u32 (!%p142_p2), 1, %s803_s12  }
  0x2b   : > { %145 = sbr.rel (%p142_p2) target bundleno = 846 (0x34e), region = 24  ;;  %s592_s3 = sshll.u32 (!%p142_p2), %s951_s30, 5 }
  0x2c   : > { %s148_s4 = scalar_lea.sflag (!%p142_p2), [#allocation8], %s951_s30  ;;  %s151_s5 = scalar_lea.vmem (!%p142_p2), [#allocation7], %s592_s3 }
  0x30   : > { %790 = dma.done.wait (%p913_p9), %s148_s4, 512  }
  0x31   : > { %792 = vsyncadd (%p913_p9), %s148_s4, 4294966784  ;;  %s959_s7 = scalar_lea.vmem [#allocation10], %s592_s3  ;;  %p594_p0 = scmp.ne.s32.totalorder %s811_s14, 0 }
  0x33   : > { %180 = sbr.rel (%p594_p0) target bundleno = 281 (0x119), region = 32 }
  0x38   : > { %v182_v0 = vld [vmem:[%s151_s5 + $0x8] sm:$0xff]  ;;  %v184_v1 = vld [vmem:[%s151_s5 + $0x18] sm:$0xff]  ;;  %v181_v2 = vld [vmem:[%s151_s5] sm:$0xff]  ;;  %vm334_vm0 = vcmask 130048  }
  0x39   : > { %190 = vst [vmem:[#allocation2] sm:$0xff] %v182_v0  ;;  %192 = vst [vmem:[#allocation2 + $0x8] sm:$0xff] %v184_v1  ;;  %v194_v3 = vpack.c.bf16 %v184_v1, %v182_v0  ;;  %v183_v4 = vld [vmem:[%s151_s5 + $0x10] sm:$0xff] }
  0x3a   : > { %189 = vst [vmem:[#allocation2 + $0x10] sm:$0xff] %v181_v2  ;;  %191 = vst [vmem:[#allocation2 + $0x18] sm:$0xff] %v183_v4  ;;  %v193_v5 = vpack.c.bf16 %v183_v4, %v181_v2 }
  0x3b   : > { %v196_v6 = vunpack.c.l.bf16 %v194_v3  ;;  %v198_v7 = vunpack.c.h.bf16 %v194_v3  ;;  %260 = vmatprep.subr.bf16.mxu1 %v194_v3  ;;  %237 = vmatprep.mubr.bf16.mxu0 %v194_v3 }
  0x3c   : > { %v195_v8 = vunpack.c.l.bf16 %v193_v5  ;;  %v197_v9 = vunpack.c.h.bf16 %v193_v5  ;;  %261 = vmatpush1.bf16.xpose.msra.mxu1 %v193_v5  ;;  %278 = vmatprep.mubr.bf16.mxu1 %v194_v3 }
  0x3d   : > { %v200_v10 = vsub.f32 %v182_v0, %v196_v6  ;;  %v202_v11 = vsub.f32 %v184_v1, %v198_v7 }
  0x3e   : > { %v199_v12 = vsub.f32 %v181_v2, %v195_v8  ;;  %v201_v13 = vsub.f32 %v183_v4, %v197_v9 }
  0x3f   : > { %v204_v14 = vpack.c.bf16 %v202_v11, %v200_v10 }
  0x40   : > { %v203_v15 = vpack.c.bf16 %v201_v13, %v199_v12 }
  0x41   : > { %219 = vmatprep.subr.bf16.mxu0 %v204_v14 }
  0x42   : > { %220 = vmatpush1.bf16.xpose.msra.mxu0 %v203_v15 }
  0x43   : > { %279 = vmatmul.mubr.bf16.vlgmr.msra.gmra.mxu1 %v193_v5  ;;  %301 = vmatprep.subr.bf16.mxu0 %v194_v3 }
  0x49   : > { %238 = vmatmul.mubr.bf16.vlgmr.msra.gmra.mxu0 %v193_v5 }
  0x4a   : > { %302 = vmatpush1.bf16.xpose.msra.mxu0 %v193_v5  ;;  %319 = vmatprep.mubr.bf16.mxu0 %v204_v14 }
  0x51   : > { %320 = vmatmul.mubr.bf16.vlgmr.msra.gmra.mxu0 %v203_v15 }
 0x103   : > { %v280_v16 = vpop.f32.mrf.mxu1 }
 0x105   : > { %v282_v17 = vpop.f32.mrf.mxu1 }
 0x107   : > { %v283_v18 = vpop.f32.mrf.mxu1 }
 0x109   : > { %v239_v19 = vpop.f32.mrf.mxu0  ;;  %v285_v20 = vpop.f32.mrf.mxu1 }
 0x10a   : > { %v281_v24 = vadd.f32 %v280_v16, %v239_v19 }
 0x10b   : > { %v241_v21 = vpop.f32.mrf.mxu0 }
 0x10d   : > { %v242_v22 = vpop.f32.mrf.mxu0 }
 0x10e   : > { %v284_v28 = vadd.f32 %v283_v18, %v242_v22 }
 0x10f   : > { %v244_v23 = vpop.f32.mrf.mxu0 }
 0x111   : > { %v321_v25 = vpop.f32.mrf.mxu0 }
 0x112   : > { %v328_v26 = vadd.f32 %v321_v25, %v281_v24 }
 0x113   : > { %v323_v27 = vpop.f32.mrf.mxu0 }
 0x114   : > { %335 = vst.msk [vmem:[#allocation3] sm:$0xff] %vm334_vm0, %v328_v26 }
 0x115   : > { %v324_v29 = vpop.f32.mrf.mxu0 }
 0x116   : > { %v329_v30 = vadd.f32 %v324_v29, %v284_v28 }
 0x117   : > { %v326_v31 = vpop.f32.mrf.mxu0 }
 0x118   : > { %336 = vst.msk [vmem:[#allocation3 + $0x8] sm:$0xff] %vm334_vm0, %v329_v30 }
 0x119 PF: > { %p348_p9 = scmp.eq.s32.totalorder %s811_s14, 1 }
 0x11a   : > { %vm356_vm1 = vcmask (%p348_p9), 130048   ;;  %v369_v42 = vlaneseq (%p348_p9)  ;;  %s380_s24 = sld [smem:[#allocation6]] (%p348_p9)  ;;  %vm396_vm3 = vcmask (%p348_p9), 125952  }
 0x11b   : > { %353 = sbr.rel (!%p348_p9) target bundleno = 606 (0x25e), region = 44  ;;  %v354_v32 = vld [vmem:[#allocation3] sm:$0xff] (%p348_p9) }
 0x11c   : > { %v357_v34 = vsel (%p348_p9), %vm356_vm1, %v354_v32, inf  ;;  %v370_v43 = vand.u32 (%p348_p9), 127, %v369_v42 }
 0x11d   : > { %358 = vmin.xlane.f32.xlu0 (%p348_p9), %v357_v34 }
 0x11e   : > { %vm371_vm2 = vcmp.lt.s32.totalorder (%p348_p9), %v370_v43, 4 }
 0x11f   : > { %v355_v33 = vld [vmem:[#allocation3 + $0x8] sm:$0xff] (%p348_p9) }
 0x120   : > { %v360_v35 = vsel %vm356_vm1, %v355_v33, inf  ;;  %v381_v52 = vstv %s380_s24 }
 0x121   : > { %361 = vmin.xlane.f32.xlu0 %v360_v35 }
 0x1a6   : > { %v359_v36 = vpop.xlane.xlu0 %358 }
 0x1a7   : > { %v363_v37 = vsub.f32 %v359_v36, %v354_v32 }
 0x1a9   : > { %v365_v38 = vmul.f32 1.442695, %v363_v37 }
 0x1aa   : > { %v362_v39 = vpop.xlane.xlu0 %361 }
 0x1ab   : > { %694 = vpow2.f32 %v365_v38  ;;  %v364_v40 = vsub.f32 %v362_v39, %v355_v33 }
 0x1ad   : > { %v367_v41 = vmul.f32 1.442695, %v364_v40 }
 0x1af   : > { %696 = vpow2.f32 %v367_v41 }
 0x1b8   : > { %v695_v44 = vpop.eup %694 }
 0x1b9   : > { %v372_v45 = vsel %vm371_vm2, %v695_v44, 0.0 }
 0x1ba   : > { %v374_v46 = vsel %vm356_vm1, %v372_v45, 0.0 }
 0x1bb   : > { %375 = vadd.xlane.f32.xlu1 %v374_v46 }
 0x1bc   : > { %v697_v47 = vpop.eup %696 }
 0x1bd   : > { %v373_v48 = vsel %vm371_vm2, %v697_v47, 0.0 }
 0x1be   : > { %v377_v49 = vsel %vm356_vm1, %v373_v48, 0.0 }
 0x1bf   : > { %378 = vadd.xlane.f32.xlu1 %v377_v49 }
 0x244   : > { %v376_v50 = vpop.xlane.xlu1 %375 }
 0x245   : > { %698 = vrcp.f32 %v376_v50 }
 0x248   : > { %v379_v51 = vpop.xlane.xlu1 %378 }
 0x249   : > { %700 = vrcp.f32 %v379_v51 }
 0x252   : > { %v699_v53 = vpop.eup %698 }
 0x253   : > { %v383_v54 = vmul.f32 %v699_v53, %v381_v52 }
 0x255   : > { %v386_v55 = vmul.f32 %v383_v54, %v372_v45 }
 0x256   : > { %v701_v56 = vpop.eup %700 }
 0x257   : > { %v608_v57 = vpack.c.bf16 %v386_v55, %v386_v55  ;;  %v385_v58 = vmul.f32 %v701_v56, %v381_v52 }
 0x259   : > { %397 = vst.msk [vmem:[#allocation4] sm:$0xf] %vm396_vm3, %v608_v57  ;;  %v387_v59 = vmul.f32 %v385_v58, %v373_v48 }
 0x25b   : > { %v609_v60 = vpack.c.bf16 %v387_v59, %v387_v59 }
 0x25d   : > { %398 = vst.msk [vmem:[#allocation4 + $0x4] sm:$0xf] %vm396_vm3, %v609_v60 }
 0x25e PF: > { %p598_p1 = scmp.ne.s32.totalorder %s811_s14, 1 }
 0x260   : > { %401 = sbr.rel (%p598_p1) target bundleno = 822 (0x336), region = 48 }
 0x265   : > { %v407_v61 = vld [vmem:[#allocation2] sm:$0xff]  ;;  %v409_v62 = vld [vmem:[#allocation2 + $0x8] sm:$0xff]  ;;  %v406_v63 = vld [vmem:[#allocation2 + $0x10] sm:$0xff]  ;;  %v832_v2 = vmov 0   ;;  %vm419_vm4 = vcmask 130048  }
 0x266   : > { %v413_v0 = vpack.c.bf16 %v409_v62, %v407_v61  ;;  %v408_v1 = vld [vmem:[#allocation2 + $0x18] sm:$0xff]  ;;  %455 = vmatprep.mubr.bf16.mxu0 %v832_v2  ;;  %v702_v4 = vld [vmem:[#allocation4] sm:$0xff]  }
 0x267   : > { %v412_v3 = vpack.c.bf16 %v408_v1, %v406_v63 }
 0x268   : > { %437 = vmatprep.subr.bf16.mxu0 %v413_v0 }
 0x269   : > { %438 = vmatpush1.bf16.msra.mxu0 %v412_v3 }
 0x26c   : > { %600 = vmatmul.mubr.msk.bf16.vlgmr.msra.gmra.mxu0 %vm419_vm4, %v702_v4 }
 0x32c   : > { %v457_v5 = vpop.f32.mrf.mxu0 }
 0x32d   : > { %v458_v6 = vadd.f32 %v457_v5, %v406_v63 }
 0x32e   : > { %v459_v7 = vpop.f32.mrf.mxu0 }
 0x32f   : > { %466 = vst [vmem:[%s959_s7] sm:$0xff] %v458_v6  ;;  %v460_v8 = vadd.f32 %v459_v7, %v407_v61 }
 0x330   : > { %v461_v9 = vpop.f32.mrf.mxu0 }
 0x331   : > { %467 = vst [vmem:[%s959_s7 + $0x8] sm:$0xff] %v460_v8  ;;  %v462_v10 = vadd.f32 %v461_v9, %v408_v1 }
 0x332   : > { %v463_v11 = vpop.f32.mrf.mxu0 }
 0x333   : > { %468 = vst [vmem:[%s959_s7 + $0x10] sm:$0xff] %v462_v10  ;;  %v464_v12 = vadd.f32 %v463_v11, %v409_v62 }
 0x335   : > { %469 = vst [vmem:[%s959_s7 + $0x18] sm:$0xff] %v464_v12 }
 0x336 PF: > { %s610_s14 = sshll.u32 %s815_s15, 9  ;;  %s487_s10 = sshll.u32 %s959_s7, 4  ;;  %s979_s10 = int_to_ptr.vmem [resolvable:$true] %s487_s10 }
 0x337   : > { %s976_s9 = scalar_lea.hbm %s1034_s2, %s610_s14  ;;  %s471_s0 = scalar_lea.sflag [#allocation9], %s951_s30 }
 0x338   : > { %s731_s19 = scalar_lea.vmem %s979_s10, 512  ;;  %s833_s22 = smov [#allocation10]  }
 0x339   : > { %p732_p4 = scmp.ne.s32.totalorder %s979_s10, %s731_s19  ;;  %s735_s26 = sshll.u32 %s833_s22, 4  ;;  %s736_s26 = int_to_ptr.vmem [resolvable:$false] %s735_s26 }
 0x33a   : > { %s737_s15 = scalar_lea.vmem %s736_s26, 1024  ;;  %p738_p7 = scmp.lt.s32.totalorder %s979_s10, %s736_s26 }
 0x33b   : > { %p733_p5 = pnand %p732_p4, %p917_p10  ;;  %p739_p8 = scmp.lt.s32.totalorder %s737_s15, %s731_s19 }
 0x33d   : > { %p734_p6 = pneg %p733_p5  ;;  %p740_p12 = por %p739_p8, %p738_p7 }
 0x33f   : > { %p741_p3 = pnand %p740_p12, %p734_p6 }
 0x341   : > { %744 = shalt.err (!%p741_p3)
}
 0x342   : > { %s745_s23 = scalar_lea.hbm %s976_s9, 512  ;;  %s749_s4 = scalar_lea.hbm %s1034_s2, 1024 }
 0x343   : > { %p746_p13 = scmp.ne.s32.totalorder %s976_s9, %s745_s23  ;;  %p750_p9 = scmp.lt.s32.totalorder %s976_s9, %s1034_s2 }
 0x344   : > { %p751_p1 = scmp.lt.s32.totalorder %s749_s4, %s745_s23 }
 0x345   : > { %p747_p2 = pnand %p746_p13, %p917_p10 }
 0x346   : > { %p752_p4 = por %p751_p1, %p750_p9 }
 0x347   : > { %p748_p0 = pneg %p747_p2 }
 0x349   : > { %p753_p5 = pnand %p752_p4, %p748_p0 }
 0x34b   : > { %756 = shalt.err (!%p753_p5)
}
 0x34c   : > { %s834_s24 = smov 256   ;;  %s835_s14 = smov 16  }
 0x34d   : > { %613 = dma.vmem_to_hbm [thread:$0]  (%p917_p10), %s979_s10, 512, %s976_s9, %s471_s0, %s834_s24, %s834_s24, %s835_s14  }
 0x34e PF: > { %p624_p6 = scmp.ge.s32.totalorder %s827_s18, 2  ;;  %s502_s6 = sand.u32 1, %s799_s11  }
 0x34f   : > { %s503_s8 = scalar_lea.sflag [#allocation9], %s502_s6 }
 0x350   : > { %p620_p7 = pnand %p624_p6, %p923_p11 }
 0x352   : > { %p621_p8 = pneg %p620_p7 }
 0x354   : > { %794 = dma.done.wait (%p621_p8), %s503_s8, 512  }
 0x355   : > { %796 = vsyncadd (%p621_p8), %s503_s8, 4294966784  ;;  %s19_s18 = sadd.s32 1, %s827_s18   ;;  %s1040_s11 = smov %s803_s12 }
 0x356   : > { %p16_p12 = scmp.ge.s32.totalorder %s19_s18, 6   ;;  %s1041_s12 = smov %s807_s13 }
 0x357   : > { %s1042_s13 = smov %s930_s29  ;;  %s1043_s14 = smov %s819_s16 }
 0x358   : > { %s1044_s15 = smov %s823_s17  ;;  %s1045_s16 = smov %s1048_s20 }
 0x359   : > { %s1046_s17 = smov %s1052_s21  ;;  %18 = sbr.rel (!%p16_p12) target bundleno = 9 (0x9), region = 91 }
 0x35e   :  { %508 = vsyncpa [#allocation8], 1 }
 0x35f   :  { %510 = vsyncpa [#allocation8 + $0x1], 1 }
 0x360   :  { %511 = vsyncpa [#allocation9], 1 }
 0x361   :  { %513 = vsyncpa [#allocation9 + $0x1], 1 }

</bundles_post_ra>
